<compile_context>
chip_gen: v7x
topology: tpu7x:2x2x1
jax: 0.10.0
libtpu: 0.0.40
codegen_flags: <defaults>
</compile_context>

<pallas_src>
import functools

import jax
import jax.numpy as jnp
from jax import lax
from jax.experimental import pallas as pl
from jax.experimental.pallas import tpu as pltpu

TOPK = 15
NEG_INF = -jnp.inf
SLAB = 8           # rows peeled together (one f32 sublane group)


def _round_up(n, m):
    return (n + m - 1) // m * m


def _device_kind():
    try:
        return jax.devices()[0].device_kind.lower()
    except Exception:
        return ""


def _default_num_cores():
    # Only v7x has 2 TensorCores per chip; on 1-TC chips a size-2 "parallel"
    # axis is just a serial loop over (partially masked) duplicate tiles.
    kind = _device_kind()
    return 2 if ("v7" in kind or "7x" in kind) else 1


def _peel_dtype(x_dtype):
    # bf16 max / == / compare are exact and halve vld/VALU/XLU work per
    # element, but v5-class chips have no bf16 VPU, so upcast there.
    if jnp.dtype(x_dtype) == jnp.bfloat16 and "v5" not in _device_kind():
        return jnp.bfloat16
    return jnp.float32


def _pick_tile(batch, n_classes, itemsize):
    # Size the batch tile so the double-buffered input DMA footprint stays
    # around ~8 MiB: comfortably inside every generation's scoped VMEM
    # (v7x: 64 MiB physical / ~32 MiB default scoped per TensorCore).
    budget = 8 * 1024 * 1024
    tb = budget // (2 * n_classes * itemsize)
    tb = min(max(tb, SLAB), 512, _round_up(batch, SLAB))
    return _round_up(tb, SLAB)


def _gb_loss_kernel(x_ref, y_ref, out_ref, *, batch, tb, tiles_per_core,
                    peel_dtype):
    c = pl.program_id(0)                      # core-split axis ("parallel")
    i = pl.program_id(1)                      # batch-tile axis (accumulator)
    C = x_ref.shape[-1]
    n_slabs = tb // SLAB

    # Global row offset of this tile.  For clamped duplicate iterations
    # (c*tiles_per_core + i >= num_tiles) this is >= batch, so every row of
    # the tile is masked below and contributes exactly 0.
    row0 = (c * tiles_per_core + i) * tb

    # Hoisted iotas (JAX does not CSE broadcast_in_dim inside loops).
    col = lax.broadcasted_iota(jnp.int32, (SLAB, C), 1)
    lane = lax.broadcasted_iota(jnp.int32, (8, 128), 1)
    sub = lax.broadcasted_iota(jnp.int32, (SLAB, 1), 0)

    def slab_body(s, tile_acc):
        r = pl.multiple_of(s * SLAB, SLAB)
        xs = x_ref[pl.ds(r, SLAB), :]                      # (SLAB, C) native
        ys = y_ref[pl.ds(r, SLAB), :]                      # (SLAB, 1) int32

        gt_mask = col == ys                                # one-hot per row
        xp = xs.astype(peel_dtype)
        # NOTE: labels are assumed in-range [0, C); out-of-range labels give
        # x_gt = 0 (a finite, wrong loss) rather than an error.
        x_gt = jnp.sum(jnp.where(gt_mask, xp, 0.0), axis=1,
                       keepdims=True).astype(jnp.float32)  # exact (one-hot)
        x1 = jnp.where(gt_mask, NEG_INF, xp)               # read-only, vregs

        # --- top-15 peel with multiplicity counting (x1 never written) -----
        cur = jnp.max(x1, axis=1, keepdims=True)           # (SLAB,1) peel dt
        cur_f = cur.astype(jnp.float32)
        m = jnp.maximum(x_gt, cur_f)                       # stability shift
        cnt = jnp.sum((x1 == cur).astype(jnp.float32), axis=1, keepdims=True)
        take = jnp.minimum(cnt, jnp.float32(TOPK))
        acc = take * jnp.exp(cur_f - m)
        remaining = jnp.float32(TOPK) - take

        def peel(_, carry):
            cur, acc, remaining = carry
            nxt = jnp.max(jnp.where(x1 < cur, x1, NEG_INF),
                          axis=1, keepdims=True)
            cnt = jnp.sum((x1 == nxt).astype(jnp.float32),
                          axis=1, keepdims=True)
            take = jnp.minimum(cnt, remaining)
            acc = acc + take * jnp.exp(nxt.astype(jnp.float32) - m)
            return nxt, acc, remaining - take

        # Carry is three (SLAB,1) vectors -> full unroll is cheap and lets
        # the scheduler hide cnt/exp under the next iteration's compare/max.
        _, acc, _ = lax.fori_loop(0, TOPK - 1, peel, (cur, acc, remaining),
                                  unroll=True)

        # logsumexp over the 16 kept values; target class is index 0 (gt).
        denom = acc + jnp.exp(x_gt - m)
        loss_row = jnp.log(denom) + m - x_gt               # (SLAB, 1) f32

        # Mask rows beyond the real batch (block padding / duplicate tiles).
        row = row0 + s * SLAB + sub
        loss_row = jnp.where(row < batch, loss_row, 0.0)

        # Spread partial sums across lanes (keyed by slab index) to keep the
        # per-accumulator running-sum rounding error tiny.
        return tile_acc + jnp.where(lane == s % 128, loss_row, 0.0)

    tile_acc = lax.fori_loop(0, n_slabs, slab_body,
                             jnp.zeros((8, 128), jnp.float32))

    # Resident per-core partial-sum accumulator (output block fixed along i).
    @pl.when(i == 0)
    def _():
        out_ref[...] = jnp.zeros_like(out_ref)

    out_ref[...] = out_ref[...] + tile_acc


def gb_loss(x, y, *, tb=None, num_cores=None):
    """x: [B, C] logits (any float dtype), y: [B] int labels. Scalar mean loss."""
    B, C = x.shape
    assert C >= TOPK + 1, "need at least 16 classes for GB loss"
    # TODO(synk): for very large C (LM vocab sizes) add class-dim chunking with
    # a two-level top-k so an 8-row slab still fits the vreg file.
    y2 = y.astype(jnp.int32).reshape(B, 1)

    itemsize = jnp.dtype(x.dtype).itemsize
    if tb is None:
        tb = _pick_tile(B, C, itemsize)
    tb = max(SLAB, _round_up(min(tb, _round_up(B, SLAB)), SLAB))

    num_tiles = pl.cdiv(B, tb)
    if num_cores is None:
        num_cores = _default_num_cores()
    num_cores = max(1, min(num_cores, num_tiles))
    tiles_per_core = pl.cdiv(num_tiles, num_cores)

    def in_map(c, i):
        # Clamp so block indices never leave the array (extra iterations on
        # the last core re-read the final tile; their rows are masked).
        t = jnp.minimum(c * tiles_per_core + i, num_tiles - 1)
        return (t, 0)

    kernel = functools.partial(
        _gb_loss_kernel, batch=B, tb=tb, tiles_per_core=tiles_per_core,
        peel_dtype=_peel_dtype(x.dtype))

    # Tight, shape-derived VMEM budget: double-buffered inputs + output block
    # + slack; capped at 32 MiB so it stays safe on v7x (64 MiB per-TC VMEM).
    vmem_needed = 2 * (tb * C * itemsize + tb * 4) + 2 * 8 * 128 * 4
    vmem_limit = int(min(32 * 1024 * 1024,
                         max(16 * 1024 * 1024, vmem_needed + 8 * 1024 * 1024)))

    # TODO(synk): verify the size-2 "parallel" axis actually shards across
    # v7x's two TensorCores in the compiled artifact; if not, switch to
    # pltpu.CORE_PARALLEL / an explicit pl.core_map.
    out = pl.pallas_call(
        kernel,
        out_shape=jax.ShapeDtypeStruct((num_cores * 8, 128), jnp.float32),
        grid=(num_cores, tiles_per_core),
        in_specs=[
            pl.BlockSpec((tb, C), in_map),   # logits DMA'd in native dtype
            pl.BlockSpec((tb, 1), in_map),   # labels
        ],
        # Lane-dense (8,128) block per core holding spread partial sums.
        out_specs=pl.BlockSpec((8, 128), lambda c, i: (c, 0)),
        compiler_params=pltpu.CompilerParams(
            dimension_semantics=("parallel", "arbitrary"),
            vmem_limit_bytes=vmem_limit,
        ),
    )(x, y2)

    return jnp.sum(out) / jnp.float32(B)


def _gb_loss_ref(x, y):
    """Pure-JAX reference (mirrors the PyTorch forward)."""
    B, C = x.shape
    xf = x.astype(jnp.float32)
    x_gt = xf[jnp.arange(B), y][:, None]
    x1 = xf.at[jnp.arange(B), y].set(-jnp.inf)
    x_topk = lax.top_k(x1, TOPK)[0]
    x_new = jnp.concatenate([x_gt, x_topk], axis=1)
    return jnp.mean(jax.nn.logsumexp(x_new, axis=1) - x_new[:, 0])


if __name__ == "__main__":
    key = jax.random.PRNGKey(0)
    k1, k2, k3, k4, k5, k6 = jax.random.split(key, 6)

    # Test 1: small, single tile, single core.
    B, C = 8, 32
    x = jax.random.normal(k1, (B, C), dtype=jnp.float32) * 3.0
    y = jax.random.randint(k2, (B,), 0, C, dtype=jnp.int32)
    loss = gb_loss(x, y)
    jax.block_until_ready(loss)
    ref = _gb_loss_ref(x, y)
    assert jnp.allclose(loss, ref, rtol=1e-5, atol=1e-5), (loss, ref)

    # Test 2: multiple tiles, B not a multiple of the tile, forced 2-way core
    # split (exercises resident accumulator, clamped index_map, row masking).
    B2, C2 = 20, 64
    x2 = jax.random.normal(k3, (B2, C2), dtype=jnp.float32) * 3.0
    y2 = jax.random.randint(k4, (B2,), 0, C2, dtype=jnp.int32)
    loss2 = gb_loss(x2, y2, tb=8, num_cores=2)
    jax.block_until_ready(loss2)
    ref2 = _gb_loss_ref(x2, y2)
    assert jnp.allclose(loss2, ref2, rtol=1e-5, atol=1e-5), (loss2, ref2)

    # Test 3: bf16 logits (native bf16 peel on v6e/v7x, f32 upcast on v5e).
    B3, C3 = 24, 48
    x3 = (jax.random.normal(k5, (B3, C3), dtype=jnp.float32) * 3.0
          ).astype(jnp.bfloat16)
    y3 = jax.random.randint(k6, (B3,), 0, C3, dtype=jnp.int32)
    loss3 = gb_loss(x3, y3, tb=16)
    jax.block_until_ready(loss3)
    ref3 = _gb_loss_ref(x3, y3)
    assert jnp.allclose(loss3, ref3, rtol=2e-3, atol=2e-3), (loss3, ref3)

    print("KERNEL_OK")
</pallas_src>

<mosaic_0001>
module attributes {stable_mosaic.version = 11 : i64} {
  func.func @_gb_loss_kernel(%arg0: i32, %arg1: i32, %arg2: memref<8x32xf32, #tpu.memory_space<vmem>>, %arg3: memref<8x1xi32, #tpu.memory_space<vmem>>, %arg4: memref<8x128xf32, #tpu.memory_space<vmem>>) attributes {dimension_semantics = [#tpu.dimension_semantics<parallel>, #tpu.dimension_semantics<arbitrary>], iteration_bounds = array<i64: 1, 1>, scalar_prefetch = 0 : i64, scratch_operands = 0 : i64, tpu.core_type = #tpu.core_type<tc>, window_params = [{transform_indices = @transform_0, window_bounds = array<i64: 8, 32>}, {transform_indices = @transform_1, window_bounds = array<i64: 8, 1>}, {transform_indices = @transform_2, window_bounds = array<i64: 8, 128>}]} {
    %c1_i32 = arith.constant 1 : i32
    %0 = arith.muli %arg0, %c1_i32 : i32
    %1 = arith.addi %0, %arg1 : i32
    %c8_i32 = arith.constant 8 : i32
    %2 = arith.muli %1, %c8_i32 : i32
    %3 = tpu.iota {dimensions = array<i32: 1>} : vector<8x32xi32>
    %4 = tpu.iota {dimensions = array<i32: 1>} : vector<8x128xi32>
    %5 = tpu.iota {dimensions = array<i32: 0>} : vector<8x1xi32>
    %cst = arith.constant 0.000000e+00 : f32
    %6 = vector.broadcast %cst : f32 to vector<8x128xf32>
    %c0_i32 = arith.constant 0 : i32
    %c8_i32_0 = arith.constant 8 : i32
    %7 = arith.muli %c0_i32, %c8_i32_0 : i32
    %8 = tpu.assume_multiple %7, 8 : i32
    %9 = arith.index_cast %8 : i32 to index
    %c0 = arith.constant 0 : index
    %10 = vector.load %arg2[%9, %c0] : memref<8x32xf32, #tpu.memory_space<vmem>>, vector<8x32xf32>
    %11 = arith.index_cast %8 : i32 to index
    %c0_1 = arith.constant 0 : index
    %12 = vector.load %arg3[%11, %c0_1] : memref<8x1xi32, #tpu.memory_space<vmem>>, vector<8x1xi32>
    %13 = vector.broadcast %12 : vector<8x1xi32> to vector<8x32xi32>
    %14 = arith.cmpi eq, %3, %13 : vector<8x32xi32>
    %cst_2 = arith.constant 0.000000e+00 : f32
    %15 = vector.broadcast %cst_2 : f32 to vector<8x32xf32>
    %16 = arith.select %14, %10, %15 : vector<8x32xi1>, vector<8x32xf32>
    %cst_3 = arith.constant dense<0.000000e+00> : vector<8xf32>
    %17 = vector.multi_reduction <add>, %16, %cst_3 [1] : vector<8x32xf32> to vector<8xf32>
    %18 = vector.shape_cast %17 : vector<8xf32> to vector<8x1xf32>
    %cst_4 = arith.constant 0xFF800000 : f32
    %19 = vector.broadcast %cst_4 : f32 to vector<8x32xf32>
    %20 = arith.select %14, %19, %10 : vector<8x32xi1>, vector<8x32xf32>
    %cst_5 = arith.constant dense<0xFF800000> : vector<8xf32>
    %21 = vector.multi_reduction <maximumf>, %20, %cst_5 [1] : vector<8x32xf32> to vector<8xf32>
    %22 = vector.shape_cast %21 : vector<8xf32> to vector<8x1xf32>
    %23 = arith.maximumf %18, %22 : vector<8x1xf32>
    %24 = vector.broadcast %22 : vector<8x1xf32> to vector<8x32xf32>
    %25 = arith.cmpf oeq, %20, %24 : vector<8x32xf32>
    %26 = arith.extui %25 : vector<8x32xi1> to vector<8x32xi32>
    %27 = arith.sitofp %26 : vector<8x32xi32> to vector<8x32xf32>
    %cst_6 = arith.constant dense<0.000000e+00> : vector<8xf32>
    %28 = vector.multi_reduction <add>, %27, %cst_6 [1] : vector<8x32xf32> to vector<8xf32>
    %29 = vector.shape_cast %28 : vector<8xf32> to vector<8x1xf32>
    %cst_7 = arith.constant 1.500000e+01 : f32
    %30 = vector.broadcast %cst_7 : f32 to vector<8x1xf32>
    %31 = arith.minimumf %29, %30 : vector<8x1xf32>
    %32 = arith.subf %22, %23 : vector<8x1xf32>
    %33 = math.exp %32 : vector<8x1xf32>
    %34 = arith.mulf %31, %33 : vector<8x1xf32>
    %cst_8 = arith.constant 1.500000e+01 : f32
    %35 = vector.broadcast %cst_8 : f32 to vector<8x1xf32>
    %36 = arith.subf %35, %31 : vector<8x1xf32>
    %c0_i32_9 = arith.constant 0 : i32
    %37 = vector.broadcast %22 : vector<8x1xf32> to vector<8x32xf32>
    %38 = arith.cmpf olt, %20, %37 : vector<8x32xf32>
    %cst_10 = arith.constant 0xFF800000 : f32
    %39 = vector.broadcast %cst_10 : f32 to vector<8x32xf32>
    %40 = arith.select %38, %20, %39 : vector<8x32xi1>, vector<8x32xf32>
    %cst_11 = arith.constant dense<0xFF800000> : vector<8xf32>
    %41 = vector.multi_reduction <maximumf>, %40, %cst_11 [1] : vector<8x32xf32> to vector<8xf32>
    %42 = vector.shape_cast %41 : vector<8xf32> to vector<8x1xf32>
    %43 = vector.broadcast %42 : vector<8x1xf32> to vector<8x32xf32>
    %44 = arith.cmpf oeq, %20, %43 : vector<8x32xf32>
    %45 = arith.extui %44 : vector<8x32xi1> to vector<8x32xi32>
    %46 = arith.sitofp %45 : vector<8x32xi32> to vector<8x32xf32>
    %cst_12 = arith.constant dense<0.000000e+00> : vector<8xf32>
    %47 = vector.multi_reduction <add>, %46, %cst_12 [1] : vector<8x32xf32> to vector<8xf32>
    %48 = vector.shape_cast %47 : vector<8xf32> to vector<8x1xf32>
    %49 = arith.minimumf %48, %36 : vector<8x1xf32>
    %50 = arith.subf %42, %23 : vector<8x1xf32>
    %51 = math.exp %50 : vector<8x1xf32>
    %52 = arith.mulf %49, %51 : vector<8x1xf32>
    %53 = arith.addf %34, %52 : vector<8x1xf32>
    %54 = arith.subf %36, %49 : vector<8x1xf32>
    %c1_i32_13 = arith.constant 1 : i32
    %55 = vector.broadcast %42 : vector<8x1xf32> to vector<8x32xf32>
    %56 = arith.cmpf olt, %20, %55 : vector<8x32xf32>
    %cst_14 = arith.constant 0xFF800000 : f32
    %57 = vector.broadcast %cst_14 : f32 to vector<8x32xf32>
    %58 = arith.select %56, %20, %57 : vector<8x32xi1>, vector<8x32xf32>
    %cst_15 = arith.constant dense<0xFF800000> : vector<8xf32>
    %59 = vector.multi_reduction <maximumf>, %58, %cst_15 [1] : vector<8x32xf32> to vector<8xf32>
    %60 = vector.shape_cast %59 : vector<8xf32> to vector<8x1xf32>
    %61 = vector.broadcast %60 : vector<8x1xf32> to vector<8x32xf32>
    %62 = arith.cmpf oeq, %20, %61 : vector<8x32xf32>
    %63 = arith.extui %62 : vector<8x32xi1> to vector<8x32xi32>
    %64 = arith.sitofp %63 : vector<8x32xi32> to vector<8x32xf32>
    %cst_16 = arith.constant dense<0.000000e+00> : vector<8xf32>
    %65 = vector.multi_reduction <add>, %64, %cst_16 [1] : vector<8x32xf32> to vector<8xf32>
    %66 = vector.shape_cast %65 : vector<8xf32> to vector<8x1xf32>
    %67 = arith.minimumf %66, %54 : vector<8x1xf32>
    %68 = arith.subf %60, %23 : vector<8x1xf32>
    %69 = math.exp %68 : vector<8x1xf32>
    %70 = arith.mulf %67, %69 : vector<8x1xf32>
    %71 = arith.addf %53, %70 : vector<8x1xf32>
    %72 = arith.subf %54, %67 : vector<8x1xf32>
    %c2_i32 = arith.constant 2 : i32
    %73 = vector.broadcast %60 : vector<8x1xf32> to vector<8x32xf32>
    %74 = arith.cmpf olt, %20, %73 : vector<8x32xf32>
    %cst_17 = arith.constant 0xFF800000 : f32
    %75 = vector.broadcast %cst_17 : f32 to vector<8x32xf32>
    %76 = arith.select %74, %20, %75 : vector<8x32xi1>, vector<8x32xf32>
    %cst_18 = arith.constant dense<0xFF800000> : vector<8xf32>
    %77 = vector.multi_reduction <maximumf>, %76, %cst_18 [1] : vector<8x32xf32> to vector<8xf32>
    %78 = vector.shape_cast %77 : vector<8xf32> to vector<8x1xf32>
    %79 = vector.broadcast %78 : vector<8x1xf32> to vector<8x32xf32>
    %80 = arith.cmpf oeq, %20, %79 : vector<8x32xf32>
    %81 = arith.extui %80 : vector<8x32xi1> to vector<8x32xi32>
    %82 = arith.sitofp %81 : vector<8x32xi32> to vector<8x32xf32>
    %cst_19 = arith.constant dense<0.000000e+00> : vector<8xf32>
    %83 = vector.multi_reduction <add>, %82, %cst_19 [1] : vector<8x32xf32> to vector<8xf32>
    %84 = vector.shape_cast %83 : vector<8xf32> to vector<8x1xf32>
    %85 = arith.minimumf %84, %72 : vector<8x1xf32>
    %86 = arith.subf %78, %23 : vector<8x1xf32>
    %87 = math.exp %86 : vector<8x1xf32>
    %88 = arith.mulf %85, %87 : vector<8x1xf32>
    %89 = arith.addf %71, %88 : vector<8x1xf32>
    %90 = arith.subf %72, %85 : vector<8x1xf32>
    %c3_i32 = arith.constant 3 : i32
    %91 = vector.broadcast %78 : vector<8x1xf32> to vector<8x32xf32>
    %92 = arith.cmpf olt, %20, %91 : vector<8x32xf32>
    %cst_20 = arith.constant 0xFF800000 : f32
    %93 = vector.broadcast %cst_20 : f32 to vector<8x32xf32>
    %94 = arith.select %92, %20, %93 : vector<8x32xi1>, vector<8x32xf32>
    %cst_21 = arith.constant dense<0xFF800000> : vector<8xf32>
    %95 = vector.multi_reduction <maximumf>, %94, %cst_21 [1] : vector<8x32xf32> to vector<8xf32>
    %96 = vector.shape_cast %95 : vector<8xf32> to vector<8x1xf32>
    %97 = vector.broadcast %96 : vector<8x1xf32> to vector<8x32xf32>
    %98 = arith.cmpf oeq, %20, %97 : vector<8x32xf32>
    %99 = arith.extui %98 : vector<8x32xi1> to vector<8x32xi32>
    %100 = arith.sitofp %99 : vector<8x32xi32> to vector<8x32xf32>
    %cst_22 = arith.constant dense<0.000000e+00> : vector<8xf32>
    %101 = vector.multi_reduction <add>, %100, %cst_22 [1] : vector<8x32xf32> to vector<8xf32>
    %102 = vector.shape_cast %101 : vector<8xf32> to vector<8x1xf32>
    %103 = arith.minimumf %102, %90 : vector<8x1xf32>
    %104 = arith.subf %96, %23 : vector<8x1xf32>
    %105 = math.exp %104 : vector<8x1xf32>
    %106 = arith.mulf %103, %105 : vector<8x1xf32>
    %107 = arith.addf %89, %106 : vector<8x1xf32>
    %108 = arith.subf %90, %103 : vector<8x1xf32>
    %c4_i32 = arith.constant 4 : i32
    %109 = vector.broadcast %96 : vector<8x1xf32> to vector<8x32xf32>
    %110 = arith.cmpf olt, %20, %109 : vector<8x32xf32>
    %cst_23 = arith.constant 0xFF800000 : f32
    %111 = vector.broadcast %cst_23 : f32 to vector<8x32xf32>
    %112 = arith.select %110, %20, %111 : vector<8x32xi1>, vector<8x32xf32>
    %cst_24 = arith.constant dense<0xFF800000> : vector<8xf32>
    %113 = vector.multi_reduction <maximumf>, %112, %cst_24 [1] : vector<8x32xf32> to vector<8xf32>
    %114 = vector.shape_cast %113 : vector<8xf32> to vector<8x1xf32>
    %115 = vector.broadcast %114 : vector<8x1xf32> to vector<8x32xf32>
    %116 = arith.cmpf oeq, %20, %115 : vector<8x32xf32>
    %117 = arith.extui %116 : vector<8x32xi1> to vector<8x32xi32>
    %118 = arith.sitofp %117 : vector<8x32xi32> to vector<8x32xf32>
    %cst_25 = arith.constant dense<0.000000e+00> : vector<8xf32>
    %119 = vector.multi_reduction <add>, %118, %cst_25 [1] : vector<8x32xf32> to vector<8xf32>
    %120 = vector.shape_cast %119 : vector<8xf32> to vector<8x1xf32>
    %121 = arith.minimumf %120, %108 : vector<8x1xf32>
    %122 = arith.subf %114, %23 : vector<8x1xf32>
    %123 = math.exp %122 : vector<8x1xf32>
    %124 = arith.mulf %121, %123 : vector<8x1xf32>
    %125 = arith.addf %107, %124 : vector<8x1xf32>
    %126 = arith.subf %108, %121 : vector<8x1xf32>
    %c5_i32 = arith.constant 5 : i32
    %127 = vector.broadcast %114 : vector<8x1xf32> to vector<8x32xf32>
    %128 = arith.cmpf olt, %20, %127 : vector<8x32xf32>
    %cst_26 = arith.constant 0xFF800000 : f32
    %129 = vector.broadcast %cst_26 : f32 to vector<8x32xf32>
    %130 = arith.select %128, %20, %129 : vector<8x32xi1>, vector<8x32xf32>
    %cst_27 = arith.constant dense<0xFF800000> : vector<8xf32>
    %131 = vector.multi_reduction <maximumf>, %130, %cst_27 [1] : vector<8x32xf32> to vector<8xf32>
    %132 = vector.shape_cast %131 : vector<8xf32> to vector<8x1xf32>
    %133 = vector.broadcast %132 : vector<8x1xf32> to vector<8x32xf32>
    %134 = arith.cmpf oeq, %20, %133 : vector<8x32xf32>
    %135 = arith.extui %134 : vector<8x32xi1> to vector<8x32xi32>
    %136 = arith.sitofp %135 : vector<8x32xi32> to vector<8x32xf32>
    %cst_28 = arith.constant dense<0.000000e+00> : vector<8xf32>
    %137 = vector.multi_reduction <add>, %136, %cst_28 [1] : vector<8x32xf32> to vector<8xf32>
    %138 = vector.shape_cast %137 : vector<8xf32> to vector<8x1xf32>
    %139 = arith.minimumf %138, %126 : vector<8x1xf32>
    %140 = arith.subf %132, %23 : vector<8x1xf32>
    %141 = math.exp %140 : vector<8x1xf32>
    %142 = arith.mulf %139, %141 : vector<8x1xf32>
    %143 = arith.addf %125, %142 : vector<8x1xf32>
    %144 = arith.subf %126, %139 : vector<8x1xf32>
    %c6_i32 = arith.constant 6 : i32
    %145 = vector.broadcast %132 : vector<8x1xf32> to vector<8x32xf32>
    %146 = arith.cmpf olt, %20, %145 : vector<8x32xf32>
    %cst_29 = arith.constant 0xFF800000 : f32
    %147 = vector.broadcast %cst_29 : f32 to vector<8x32xf32>
    %148 = arith.select %146, %20, %147 : vector<8x32xi1>, vector<8x32xf32>
    %cst_30 = arith.constant dense<0xFF800000> : vector<8xf32>
    %149 = vector.multi_reduction <maximumf>, %148, %cst_30 [1] : vector<8x32xf32> to vector<8xf32>
    %150 = vector.shape_cast %149 : vector<8xf32> to vector<8x1xf32>
    %151 = vector.broadcast %150 : vector<8x1xf32> to vector<8x32xf32>
    %152 = arith.cmpf oeq, %20, %151 : vector<8x32xf32>
    %153 = arith.extui %152 : vector<8x32xi1> to vector<8x32xi32>
    %154 = arith.sitofp %153 : vector<8x32xi32> to vector<8x32xf32>
    %cst_31 = arith.constant dense<0.000000e+00> : vector<8xf32>
    %155 = vector.multi_reduction <add>, %154, %cst_31 [1] : vector<8x32xf32> to vector<8xf32>
    %156 = vector.shape_cast %155 : vector<8xf32> to vector<8x1xf32>
    %157 = arith.minimumf %156, %144 : vector<8x1xf32>
    %158 = arith.subf %150, %23 : vector<8x1xf32>
    %159 = math.exp %158 : vector<8x1xf32>
    %160 = arith.mulf %157, %159 : vector<8x1xf32>
    %161 = arith.addf %143, %160 : vector<8x1xf32>
    %162 = arith.subf %144, %157 : vector<8x1xf32>
    %c7_i32 = arith.constant 7 : i32
    %163 = vector.broadcast %150 : vector<8x1xf32> to vector<8x32xf32>
    %164 = arith.cmpf olt, %20, %163 : vector<8x32xf32>
    %cst_32 = arith.constant 0xFF800000 : f32
    %165 = vector.broadcast %cst_32 : f32 to vector<8x32xf32>
    %166 = arith.select %164, %20, %165 : vector<8x32xi1>, vector<8x32xf32>
    %cst_33 = arith.constant dense<0xFF800000> : vector<8xf32>
    %167 = vector.multi_reduction <maximumf>, %166, %cst_33 [1] : vector<8x32xf32> to vector<8xf32>
    %168 = vector.shape_cast %167 : vector<8xf32> to vector<8x1xf32>
    %169 = vector.broadcast %168 : vector<8x1xf32> to vector<8x32xf32>
    %170 = arith.cmpf oeq, %20, %169 : vector<8x32xf32>
    %171 = arith.extui %170 : vector<8x32xi1> to vector<8x32xi32>
    %172 = arith.sitofp %171 : vector<8x32xi32> to vector<8x32xf32>
    %cst_34 = arith.constant dense<0.000000e+00> : vector<8xf32>
    %173 = vector.multi_reduction <add>, %172, %cst_34 [1] : vector<8x32xf32> to vector<8xf32>
    %174 = vector.shape_cast %173 : vector<8xf32> to vector<8x1xf32>
    %175 = arith.minimumf %174, %162 : vector<8x1xf32>
    %176 = arith.subf %168, %23 : vector<8x1xf32>
    %177 = math.exp %176 : vector<8x1xf32>
    %178 = arith.mulf %175, %177 : vector<8x1xf32>
    %179 = arith.addf %161, %178 : vector<8x1xf32>
    %180 = arith.subf %162, %175 : vector<8x1xf32>
    %c8_i32_35 = arith.constant 8 : i32
    %181 = vector.broadcast %168 : vector<8x1xf32> to vector<8x32xf32>
    %182 = arith.cmpf olt, %20, %181 : vector<8x32xf32>
    %cst_36 = arith.constant 0xFF800000 : f32
    %183 = vector.broadcast %cst_36 : f32 to vector<8x32xf32>
    %184 = arith.select %182, %20, %183 : vector<8x32xi1>, vector<8x32xf32>
    %cst_37 = arith.constant dense<0xFF800000> : vector<8xf32>
    %185 = vector.multi_reduction <maximumf>, %184, %cst_37 [1] : vector<8x32xf32> to vector<8xf32>
    %186 = vector.shape_cast %185 : vector<8xf32> to vector<8x1xf32>
    %187 = vector.broadcast %186 : vector<8x1xf32> to vector<8x32xf32>
    %188 = arith.cmpf oeq, %20, %187 : vector<8x32xf32>
    %189 = arith.extui %188 : vector<8x32xi1> to vector<8x32xi32>
    %190 = arith.sitofp %189 : vector<8x32xi32> to vector<8x32xf32>
    %cst_38 = arith.constant dense<0.000000e+00> : vector<8xf32>
    %191 = vector.multi_reduction <add>, %190, %cst_38 [1] : vector<8x32xf32> to vector<8xf32>
    %192 = vector.shape_cast %191 : vector<8xf32> to vector<8x1xf32>
    %193 = arith.minimumf %192, %180 : vector<8x1xf32>
    %194 = arith.subf %186, %23 : vector<8x1xf32>
    %195 = math.exp %194 : vector<8x1xf32>
    %196 = arith.mulf %193, %195 : vector<8x1xf32>
    %197 = arith.addf %179, %196 : vector<8x1xf32>
    %198 = arith.subf %180, %193 : vector<8x1xf32>
    %c9_i32 = arith.constant 9 : i32
    %199 = vector.broadcast %186 : vector<8x1xf32> to vector<8x32xf32>
    %200 = arith.cmpf olt, %20, %199 : vector<8x32xf32>
    %cst_39 = arith.constant 0xFF800000 : f32
    %201 = vector.broadcast %cst_39 : f32 to vector<8x32xf32>
    %202 = arith.select %200, %20, %201 : vector<8x32xi1>, vector<8x32xf32>
    %cst_40 = arith.constant dense<0xFF800000> : vector<8xf32>
    %203 = vector.multi_reduction <maximumf>, %202, %cst_40 [1] : vector<8x32xf32> to vector<8xf32>
    %204 = vector.shape_cast %203 : vector<8xf32> to vector<8x1xf32>
    %205 = vector.broadcast %204 : vector<8x1xf32> to vector<8x32xf32>
    %206 = arith.cmpf oeq, %20, %205 : vector<8x32xf32>
    %207 = arith.extui %206 : vector<8x32xi1> to vector<8x32xi32>
    %208 = arith.sitofp %207 : vector<8x32xi32> to vector<8x32xf32>
    %cst_41 = arith.constant dense<0.000000e+00> : vector<8xf32>
    %209 = vector.multi_reduction <add>, %208, %cst_41 [1] : vector<8x32xf32> to vector<8xf32>
    %210 = vector.shape_cast %209 : vector<8xf32> to vector<8x1xf32>
    %211 = arith.minimumf %210, %198 : vector<8x1xf32>
    %212 = arith.subf %204, %23 : vector<8x1xf32>
    %213 = math.exp %212 : vector<8x1xf32>
    %214 = arith.mulf %211, %213 : vector<8x1xf32>
    %215 = arith.addf %197, %214 : vector<8x1xf32>
    %216 = arith.subf %198, %211 : vector<8x1xf32>
    %c10_i32 = arith.constant 10 : i32
    %217 = vector.broadcast %204 : vector<8x1xf32> to vector<8x32xf32>
    %218 = arith.cmpf olt, %20, %217 : vector<8x32xf32>
    %cst_42 = arith.constant 0xFF800000 : f32
    %219 = vector.broadcast %cst_42 : f32 to vector<8x32xf32>
    %220 = arith.select %218, %20, %219 : vector<8x32xi1>, vector<8x32xf32>
    %cst_43 = arith.constant dense<0xFF800000> : vector<8xf32>
    %221 = vector.multi_reduction <maximumf>, %220, %cst_43 [1] : vector<8x32xf32> to vector<8xf32>
    %222 = vector.shape_cast %221 : vector<8xf32> to vector<8x1xf32>
    %223 = vector.broadcast %222 : vector<8x1xf32> to vector<8x32xf32>
    %224 = arith.cmpf oeq, %20, %223 : vector<8x32xf32>
    %225 = arith.extui %224 : vector<8x32xi1> to vector<8x32xi32>
    %226 = arith.sitofp %225 : vector<8x32xi32> to vector<8x32xf32>
    %cst_44 = arith.constant dense<0.000000e+00> : vector<8xf32>
    %227 = vector.multi_reduction <add>, %226, %cst_44 [1] : vector<8x32xf32> to vector<8xf32>
    %228 = vector.shape_cast %227 : vector<8xf32> to vector<8x1xf32>
    %229 = arith.minimumf %228, %216 : vector<8x1xf32>
    %230 = arith.subf %222, %23 : vector<8x1xf32>
    %231 = math.exp %230 : vector<8x1xf32>
    %232 = arith.mulf %229, %231 : vector<8x1xf32>
    %233 = arith.addf %215, %232 : vector<8x1xf32>
    %234 = arith.subf %216, %229 : vector<8x1xf32>
    %c11_i32 = arith.constant 11 : i32
    %235 = vector.broadcast %222 : vector<8x1xf32> to vector<8x32xf32>
    %236 = arith.cmpf olt, %20, %235 : vector<8x32xf32>
    %cst_45 = arith.constant 0xFF800000 : f32
    %237 = vector.broadcast %cst_45 : f32 to vector<8x32xf32>
    %238 = arith.select %236, %20, %237 : vector<8x32xi1>, vector<8x32xf32>
    %cst_46 = arith.constant dense<0xFF800000> : vector<8xf32>
    %239 = vector.multi_reduction <maximumf>, %238, %cst_46 [1] : vector<8x32xf32> to vector<8xf32>
    %240 = vector.shape_cast %239 : vector<8xf32> to vector<8x1xf32>
    %241 = vector.broadcast %240 : vector<8x1xf32> to vector<8x32xf32>
    %242 = arith.cmpf oeq, %20, %241 : vector<8x32xf32>
    %243 = arith.extui %242 : vector<8x32xi1> to vector<8x32xi32>
    %244 = arith.sitofp %243 : vector<8x32xi32> to vector<8x32xf32>
    %cst_47 = arith.constant dense<0.000000e+00> : vector<8xf32>
    %245 = vector.multi_reduction <add>, %244, %cst_47 [1] : vector<8x32xf32> to vector<8xf32>
    %246 = vector.shape_cast %245 : vector<8xf32> to vector<8x1xf32>
    %247 = arith.minimumf %246, %234 : vector<8x1xf32>
    %248 = arith.subf %240, %23 : vector<8x1xf32>
    %249 = math.exp %248 : vector<8x1xf32>
    %250 = arith.mulf %247, %249 : vector<8x1xf32>
    %251 = arith.addf %233, %250 : vector<8x1xf32>
    %252 = arith.subf %234, %247 : vector<8x1xf32>
    %c12_i32 = arith.constant 12 : i32
    %253 = vector.broadcast %240 : vector<8x1xf32> to vector<8x32xf32>
    %254 = arith.cmpf olt, %20, %253 : vector<8x32xf32>
    %cst_48 = arith.constant 0xFF800000 : f32
    %255 = vector.broadcast %cst_48 : f32 to vector<8x32xf32>
    %256 = arith.select %254, %20, %255 : vector<8x32xi1>, vector<8x32xf32>
    %cst_49 = arith.constant dense<0xFF800000> : vector<8xf32>
    %257 = vector.multi_reduction <maximumf>, %256, %cst_49 [1] : vector<8x32xf32> to vector<8xf32>
    %258 = vector.shape_cast %257 : vector<8xf32> to vector<8x1xf32>
    %259 = vector.broadcast %258 : vector<8x1xf32> to vector<8x32xf32>
    %260 = arith.cmpf oeq, %20, %259 : vector<8x32xf32>
    %261 = arith.extui %260 : vector<8x32xi1> to vector<8x32xi32>
    %262 = arith.sitofp %261 : vector<8x32xi32> to vector<8x32xf32>
    %cst_50 = arith.constant dense<0.000000e+00> : vector<8xf32>
    %263 = vector.multi_reduction <add>, %262, %cst_50 [1] : vector<8x32xf32> to vector<8xf32>
    %264 = vector.shape_cast %263 : vector<8xf32> to vector<8x1xf32>
    %265 = arith.minimumf %264, %252 : vector<8x1xf32>
    %266 = arith.subf %258, %23 : vector<8x1xf32>
    %267 = math.exp %266 : vector<8x1xf32>
    %268 = arith.mulf %265, %267 : vector<8x1xf32>
    %269 = arith.addf %251, %268 : vector<8x1xf32>
    %270 = arith.subf %252, %265 : vector<8x1xf32>
    %c13_i32 = arith.constant 13 : i32
    %271 = vector.broadcast %258 : vector<8x1xf32> to vector<8x32xf32>
    %272 = arith.cmpf olt, %20, %271 : vector<8x32xf32>
    %cst_51 = arith.constant 0xFF800000 : f32
    %273 = vector.broadcast %cst_51 : f32 to vector<8x32xf32>
    %274 = arith.select %272, %20, %273 : vector<8x32xi1>, vector<8x32xf32>
    %cst_52 = arith.constant dense<0xFF800000> : vector<8xf32>
    %275 = vector.multi_reduction <maximumf>, %274, %cst_52 [1] : vector<8x32xf32> to vector<8xf32>
    %276 = vector.shape_cast %275 : vector<8xf32> to vector<8x1xf32>
    %277 = vector.broadcast %276 : vector<8x1xf32> to vector<8x32xf32>
    %278 = arith.cmpf oeq, %20, %277 : vector<8x32xf32>
    %279 = arith.extui %278 : vector<8x32xi1> to vector<8x32xi32>
    %280 = arith.sitofp %279 : vector<8x32xi32> to vector<8x32xf32>
    %cst_53 = arith.constant dense<0.000000e+00> : vector<8xf32>
    %281 = vector.multi_reduction <add>, %280, %cst_53 [1] : vector<8x32xf32> to vector<8xf32>
    %282 = vector.shape_cast %281 : vector<8xf32> to vector<8x1xf32>
    %283 = arith.minimumf %282, %270 : vector<8x1xf32>
    %284 = arith.subf %276, %23 : vector<8x1xf32>
    %285 = math.exp %284 : vector<8x1xf32>
    %286 = arith.mulf %283, %285 : vector<8x1xf32>
    %287 = arith.addf %269, %286 : vector<8x1xf32>
    %288 = arith.subf %270, %283 : vector<8x1xf32>
    %289 = arith.subf %18, %23 : vector<8x1xf32>
    %290 = math.exp %289 : vector<8x1xf32>
    %291 = arith.addf %287, %290 : vector<8x1xf32>
    %292 = math.log %291 : vector<8x1xf32>
    %293 = arith.addf %292, %23 : vector<8x1xf32>
    %294 = arith.subf %293, %18 : vector<8x1xf32>
    %c8_i32_54 = arith.constant 8 : i32
    %295 = arith.muli %c0_i32, %c8_i32_54 : i32
    %296 = arith.addi %2, %295 : i32
    %297 = vector.broadcast %296 : i32 to vector<8x1xi32>
    %298 = arith.addi %297, %5 : vector<8x1xi32>
    %c8_i32_55 = arith.constant 8 : i32
    %299 = vector.broadcast %c8_i32_55 : i32 to vector<8x1xi32>
    %300 = arith.cmpi slt, %298, %299 : vector<8x1xi32>
    %cst_56 = arith.constant 0.000000e+00 : f32
    %301 = vector.broadcast %cst_56 : f32 to vector<8x1xf32>
    %302 = arith.select %300, %294, %301 : vector<8x1xi1>, vector<8x1xf32>
    %c128_i32 = arith.constant 128 : i32
    %c0_i32_57 = arith.constant 0 : i32
    %303 = arith.cmpi eq, %c128_i32, %c0_i32_57 : i32
    %c1_i32_58 = arith.constant 1 : i32
    %304 = arith.select %303, %c1_i32_58, %c128_i32 : i32
    %305 = arith.remsi %c0_i32, %304 : i32
    %c0_i32_59 = arith.constant 0 : i32
    %306 = arith.cmpi ne, %305, %c0_i32_59 : i32
    %c0_i32_60 = arith.constant 0 : i32
    %307 = arith.cmpi slt, %305, %c0_i32_60 : i32
    %c0_i32_61 = arith.constant 0 : i32
    %308 = arith.cmpi slt, %304, %c0_i32_61 : i32
    %309 = arith.xori %307, %308 : i1
    %310 = arith.andi %309, %306 : i1
    %311 = arith.addi %305, %304 : i32
    %312 = arith.select %310, %311, %305 : i32
    %313 = vector.broadcast %312 : i32 to vector<8x128xi32>
    %314 = arith.cmpi eq, %4, %313 : vector<8x128xi32>
    %cst_62 = arith.constant 0.000000e+00 : f32
    %315 = vector.shape_cast %302 : vector<8x1xf32> to vector<8x1xf32>
    %316 = vector.broadcast %315 : vector<8x1xf32> to vector<8x128xf32>
    %317 = vector.broadcast %cst_62 : f32 to vector<8x128xf32>
    %318 = arith.select %314, %316, %317 : vector<8x128xi1>, vector<8x128xf32>
    %319 = arith.addf %6, %318 : vector<8x128xf32>
    %c1_i32_63 = arith.constant 1 : i32
    %c0_i32_64 = arith.constant 0 : i32
    %320 = arith.cmpi eq, %arg1, %c0_i32_64 : i32
    %321 = arith.extui %320 : i1 to i32
    %c0_i32_65 = arith.constant 0 : i32
    %322 = arith.cmpi ne, %321, %c0_i32_65 : i32
    scf.if %322 {
      %cst_70 = arith.constant 0.000000e+00 : f32
      %326 = vector.broadcast %cst_70 : f32 to vector<8x128xf32>
      %c0_71 = arith.constant 0 : index
      %c0_72 = arith.constant 0 : index
      %327 = vector.load %arg4[%c0_71, %c0_72] : memref<8x128xf32, #tpu.memory_space<vmem>>, vector<8x128xf32>
      tpu.vector_store %arg4[%c0_71, %c0_72], %326 {strides = array<i32>} : memref<8x128xf32, #tpu.memory_space<vmem>>, vector<8x128xf32>,
    } else {
    }
    %c0_66 = arith.constant 0 : index
    %c0_67 = arith.constant 0 : index
    %323 = vector.load %arg4[%c0_66, %c0_67] : memref<8x128xf32, #tpu.memory_space<vmem>>, vector<8x128xf32>
    %324 = arith.addf %323, %319 : vector<8x128xf32>
    %c0_68 = arith.constant 0 : index
    %c0_69 = arith.constant 0 : index
    %325 = vector.load %arg4[%c0_68, %c0_69] : memref<8x128xf32, #tpu.memory_space<vmem>>, vector<8x128xf32>
    tpu.vector_store %arg4[%c0_68, %c0_69], %324 {strides = array<i32>} : memref<8x128xf32, #tpu.memory_space<vmem>>, vector<8x128xf32>,
    return
  }
  func.func @transform_0(%arg0: i32, %arg1: i32) -> (i32, i32) {
    %c1_i32 = arith.constant 1 : i32
    %0 = arith.muli %arg0, %c1_i32 : i32
    %1 = arith.addi %0, %arg1 : i32
    %c0_i32 = arith.constant 0 : i32
    %2 = arith.minsi %1, %c0_i32 : i32
    %c0_i32_0 = arith.constant 0 : i32
    %c0_i32_1 = arith.constant 0 : i32
    return %2, %c0_i32_0 : i32, i32
  }
  func.func @transform_1(%arg0: i32, %arg1: i32) -> (i32, i32) {
    %c1_i32 = arith.constant 1 : i32
    %0 = arith.muli %arg0, %c1_i32 : i32
    %1 = arith.addi %0, %arg1 : i32
    %c0_i32 = arith.constant 0 : i32
    %2 = arith.minsi %1, %c0_i32 : i32
    %c0_i32_0 = arith.constant 0 : i32
    %c0_i32_1 = arith.constant 0 : i32
    return %2, %c0_i32_0 : i32, i32
  }
  func.func @transform_2(%arg0: i32, %arg1: i32) -> (i32, i32) {
    %c0_i32 = arith.constant 0 : i32
    %c0_i32_0 = arith.constant 0 : i32
    return %arg0, %c0_i32 : i32, i32
  }
}

</mosaic_0001>

<bundles_post_ra>
// kernel: tpu_custom_call.1
= control target key start
LH: loop header
LB: loop body
LE: loop exit
PB: predicated region body
PF: predicated region fallthrough
CT: control target
= control target key end

     0   :  { %s754_s0 = inlined_call_operand.vmem [shape: f32[8,32], index: 0, kind: input, shape index: {}]   ;;  %s755_s1 = inlined_call_operand.vmem [shape: s32[8,1], index: 1, kind: input, shape index: {}]   ;;  %s756_s2 = inlined_call_operand.hbm [shape: f32[8,128], index: 2, kind: output, shape index: {}]  }
   0x1   :  { %v73_v0 = vld [vmem:[%s755_s1] sm:$0xff] }
   0x2   :  { %7 = vsyncpa [#allocation3], 0  ;;  %v477_v1 = vmov 0   ;;  %v68_v2 = vlaneseq  ;;  %v72_v4 = vld [vmem:[%s754_s0] sm:$0xff]  ;;  %vm79_vm0 = vcmask 261120   ;;  %v478_v48 = vmov 0.0  }
   0x3   :  { %418 = vset.pattern.permute.xlu0 %v477_v1  ;;  %s479_s0 = smov [#allocation2]  }
   0x4   :  { %75 = vperm.xlu0 %418, %v73_v0   ;;  %v498_v3 = vand.u32 127, %v68_v2  ;;  %s380_s1 = sshll.u32 %s479_s0, 4  ;;  %s381_s1 = int_to_ptr.vmem [resolvable:$true] %s380_s1 }
   0x5   :  { %s453_s13 = scalar_lea.vmem %s381_s1, 128  ;;  %p458_p1 = scmp.lt.s32.totalorder %s381_s1, %s381_s1 }
   0x6   :  { %p454_p0 = scmp.ne.s32.totalorder %s381_s1, %s453_s13  ;;  %p459_p2 = scmp.lt.s32.totalorder %s453_s13, %s453_s13 }
   0x8   :  { %p460_p3 = por %p459_p2, %p458_p1 }
   0xa   :  { %p461_p4 = pnand %p460_p3, %p454_p0 }
  0x83   :  { %v76_v5 = vpop.permute.xlu0 %75 }
  0x84   :  { %vm77_vm1 = vcmp.eq.s32.totalorder %v498_v3, %v76_v5 }
  0x85   :  { %v504_v6 = vsel %vm77_vm1, -inf, %v72_v4  ;;  %v506_v7 = vsel %vm77_vm1, %v72_v4, 0.0 }
  0x86   :  { %v84_v8 = vsel %vm79_vm0, %v504_v6, -inf  ;;  %v80_v53 = vsel %vm79_vm0, %v506_v7, 0.0 }
  0x87   :  { %85 = vmax.xlane.f32.xlu0 %v84_v8 }
 0x114   :  { %v510_v9 = vpop.xlane.xlu0 %85 }
 0x115   :  { %vm100_vm2 = vcmp.lt.f32.partialorder %v504_v6, %v510_v9  ;;  %vm88_vm15 = vcmp.eq.f32.partialorder %v504_v6, %v510_v9 }
 0x116   :  { %v101_v10 = vsel %vm100_vm2, %v504_v6, -inf  ;;  %v400_v49 = vsel %vm88_vm15, 1.0, %v478_v48 }
 0x117   :  { %v102_v11 = vsel %vm79_vm0, %v101_v10, -inf  ;;  %v91_v50 = vsel %vm79_vm0, %v400_v49, 0.0 }
 0x118   :  { %103 = vmax.xlane.f32.xlu1 %v102_v11 }
 0x1a5   :  { %v516_v12 = vpop.xlane.xlu1 %103 }
 0x1a6   :  { %vm118_vm3 = vcmp.lt.f32.partialorder %v504_v6, %v516_v12 }
 0x1a7   :  { %v119_v13 = vsel %vm118_vm3, %v504_v6, -inf }
 0x1a8   :  { %v120_v14 = vsel %vm79_vm0, %v119_v13, -inf }
 0x1a9   :  { %121 = vmax.xlane.f32.xlu1 %v120_v14 }
 0x236   :  { %v522_v15 = vpop.xlane.xlu1 %121 }
 0x237   :  { %vm136_vm4 = vcmp.lt.f32.partialorder %v504_v6, %v522_v15  ;;  %vm123_vm1 = vcmp.eq.f32.partialorder %v504_v6, %v522_v15 }
 0x238   :  { %v137_v16 = vsel %vm136_vm4, %v504_v6, -inf  ;;  %v402_v51 = vsel %vm123_vm1, 1.0, %v478_v48 }
 0x239   :  { %v138_v17 = vsel %vm79_vm0, %v137_v16, -inf  ;;  %v126_v52 = vsel %vm79_vm0, %v402_v51, 0.0 }
 0x23a   :  { %139 = vmax.xlane.f32.xlu1 %v138_v17 }
 0x2c7   :  { %v528_v18 = vpop.xlane.xlu1 %139 }
 0x2c8   :  { %vm154_vm5 = vcmp.lt.f32.partialorder %v504_v6, %v528_v18 }
 0x2c9   :  { %v155_v19 = vsel %vm154_vm5, %v504_v6, -inf }
 0x2ca   :  { %v156_v20 = vsel %vm79_vm0, %v155_v19, -inf }
 0x2cb   :  { %157 = vmax.xlane.f32.xlu1 %v156_v20 }
 0x358   :  { %v534_v21 = vpop.xlane.xlu1 %157 }
 0x359   :  { %vm172_vm6 = vcmp.lt.f32.partialorder %v504_v6, %v534_v21 }
 0x35a   :  { %v173_v22 = vsel %vm172_vm6, %v504_v6, -inf }
 0x35b   :  { %v174_v23 = vsel %vm79_vm0, %v173_v22, -inf }
 0x35c   :  { %175 = vmax.xlane.f32.xlu1 %v174_v23 }
 0x3e9   :  { %v540_v24 = vpop.xlane.xlu1 %175 }
 0x3ea   :  { %vm190_vm7 = vcmp.lt.f32.partialorder %v504_v6, %v540_v24  ;;  %vm177_vm2 = vcmp.eq.f32.partialorder %v504_v6, %v540_v24 }
 0x3eb   :  { %v191_v25 = vsel %vm190_vm7, %v504_v6, -inf  ;;  %v405_v54 = vsel %vm177_vm2, 1.0, %v478_v48 }
 0x3ec   :  { %v192_v26 = vsel %vm79_vm0, %v191_v25, -inf  ;;  %v180_v55 = vsel %vm79_vm0, %v405_v54, 0.0 }
 0x3ed   :  { %193 = vmax.xlane.f32.xlu1 %v192_v26 }
 0x47a   :  { %v546_v27 = vpop.xlane.xlu1 %193 }
 0x47b   :  { %vm208_vm8 = vcmp.lt.f32.partialorder %v504_v6, %v546_v27 }
 0x47c   :  { %v209_v28 = vsel %vm208_vm8, %v504_v6, -inf  ;;  %vm105_vm8 = vcmp.eq.f32.partialorder %v504_v6, %v516_v12 }
 0x47d   :  { %v210_v29 = vsel %vm79_vm0, %v209_v28, -inf  ;;  %v401_v4 = vsel %vm105_vm8, 1.0, %v478_v48 }
 0x47e   :  { %211 = vmax.xlane.f32.xlu1 %v210_v29  ;;  %v108_v5 = vsel %vm79_vm0, %v401_v4, 0.0 }
 0x50b   :  { %v552_v30 = vpop.xlane.xlu1 %211 }
 0x50c   :  { %vm226_vm9 = vcmp.lt.f32.partialorder %v504_v6, %v552_v30  ;;  %vm213_vm3 = vcmp.eq.f32.partialorder %v504_v6, %v552_v30 }
 0x50d   :  { %v227_v31 = vsel %vm226_vm9, %v504_v6, -inf  ;;  %v407_v56 = vsel %vm213_vm3, 1.0, %v478_v48  ;;  %vm141_vm9 = vcmp.eq.f32.partialorder %v504_v6, %v528_v18 }
 0x50e   :  { %v228_v32 = vsel %vm79_vm0, %v227_v31, -inf  ;;  %v216_v57 = vsel %vm79_vm0, %v407_v56, 0.0  ;;  %v403_v7 = vsel %vm141_vm9, 1.0, %v478_v48 }
 0x50f   :  { %229 = vmax.xlane.f32.xlu1 %v228_v32  ;;  %v144_v8 = vsel %vm79_vm0, %v403_v7, 0.0 }
 0x59c   :  { %v558_v33 = vpop.xlane.xlu1 %229 }
 0x59d   :  { %vm244_vm10 = vcmp.lt.f32.partialorder %v504_v6, %v558_v33 }
 0x59e   :  { %v245_v34 = vsel %vm244_vm10, %v504_v6, -inf  ;;  %vm159_vm10 = vcmp.eq.f32.partialorder %v504_v6, %v534_v21 }
 0x59f   :  { %v246_v35 = vsel %vm79_vm0, %v245_v34, -inf  ;;  %v404_v10 = vsel %vm159_vm10, 1.0, %v478_v48 }
 0x5a0   :  { %247 = vmax.xlane.f32.xlu1 %v246_v35  ;;  %v162_v11 = vsel %vm79_vm0, %v404_v10, 0.0 }
 0x62d   :  { %v564_v36 = vpop.xlane.xlu1 %247 }
 0x62e   :  { %vm262_vm11 = vcmp.lt.f32.partialorder %v504_v6, %v564_v36  ;;  %vm249_vm4 = vcmp.eq.f32.partialorder %v504_v6, %v564_v36 }
 0x62f   :  { %v263_v37 = vsel %vm262_vm11, %v504_v6, -inf  ;;  %v409_v58 = vsel %vm249_vm4, 1.0, %v478_v48  ;;  %vm195_vm11 = vcmp.eq.f32.partialorder %v504_v6, %v546_v27 }
 0x630   :  { %v264_v38 = vsel %vm79_vm0, %v263_v37, -inf  ;;  %v252_v59 = vsel %vm79_vm0, %v409_v58, 0.0  ;;  %v406_v13 = vsel %vm195_vm11, 1.0, %v478_v48 }
 0x631   :  { %265 = vmax.xlane.f32.xlu0 %v264_v38  ;;  %v198_v14 = vsel %vm79_vm0, %v406_v13, 0.0 }
 0x6be   :  { %v570_v39 = vpop.xlane.xlu0 %265 }
 0x6bf   :  { %vm280_vm12 = vcmp.lt.f32.partialorder %v504_v6, %v570_v39 }
 0x6c0   :  { %v281_v40 = vsel %vm280_vm12, %v504_v6, -inf  ;;  %vm231_vm12 = vcmp.eq.f32.partialorder %v504_v6, %v558_v33 }
 0x6c1   :  { %v282_v41 = vsel %vm79_vm0, %v281_v40, -inf  ;;  %v408_v16 = vsel %vm231_vm12, 1.0, %v478_v48 }
 0x6c2   :  { %283 = vmax.xlane.f32.xlu1 %v282_v41  ;;  %v234_v17 = vsel %vm79_vm0, %v408_v16, 0.0 }
 0x74f   :  { %v576_v42 = vpop.xlane.xlu1 %283 }
 0x750   :  { %vm298_vm13 = vcmp.lt.f32.partialorder %v504_v6, %v576_v42  ;;  %vm285_vm5 = vcmp.eq.f32.partialorder %v504_v6, %v576_v42 }
 0x751   :  { %v299_v43 = vsel %vm298_vm13, %v504_v6, -inf  ;;  %v411_v60 = vsel %vm285_vm5, 1.0, %v478_v48  ;;  %vm267_vm13 = vcmp.eq.f32.partialorder %v504_v6, %v570_v39 }
 0x752   :  { %v300_v44 = vsel %vm79_vm0, %v299_v43, -inf  ;;  %v288_v61 = vsel %vm79_vm0, %v411_v60, 0.0  ;;  %v410_v19 = vsel %vm267_vm13, 1.0, %v478_v48 }
 0x753   :  { %301 = vmax.xlane.f32.xlu0 %v300_v44  ;;  %v270_v20 = vsel %vm79_vm0, %v410_v19, 0.0 }
 0x7e0   :  { %v582_v45 = vpop.xlane.xlu0 %301 }
 0x7e1   :  { %vm316_vm14 = vcmp.lt.f32.partialorder %v504_v6, %v582_v45 }
 0x7e2   :  { %v317_v46 = vsel %vm316_vm14, %v504_v6, -inf  ;;  %vm303_vm14 = vcmp.eq.f32.partialorder %v504_v6, %v582_v45 }
 0x7e3   :  { %v318_v47 = vsel %vm79_vm0, %v317_v46, -inf  ;;  %v412_v22 = vsel %vm303_vm14, 1.0, %v478_v48 }
 0x7e4   :  { %319 = vmax.xlane.f32.xlu1 %v318_v47  ;;  %v306_v23 = vsel %vm79_vm0, %v412_v22, 0.0 }
 0x7e8   :  { %92 = vadd.xlane.f32.xlu1 %v91_v50 }
 0x7ec   :  { %127 = vadd.xlane.f32.xlu1 %v126_v52 }
 0x7f0   :  { %81 = vadd.xlane.f32.xlu1 %v80_v53 }
 0x7f4   :  { %181 = vadd.xlane.f32.xlu1 %v180_v55 }
 0x7f8   :  { %217 = vadd.xlane.f32.xlu1 %v216_v57 }
 0x7fc   :  { %253 = vadd.xlane.f32.xlu1 %v252_v59 }
 0x800   :  { %289 = vadd.xlane.f32.xlu1 %v288_v61 }
 0x871   :  { %v614_v62 = vpop.xlane.xlu1 %319 }
 0x872   :  { %vm334_vm6 = vcmp.lt.f32.partialorder %v504_v6, %v614_v62  ;;  %vm321_vm7 = vcmp.eq.f32.partialorder %v504_v6, %v614_v62 }
 0x873   :  { %v335_v63 = vsel %vm334_vm6, %v504_v6, -inf  ;;  %v413_v0 = vsel %vm321_vm7, 1.0, %v478_v48 }
 0x874   :  { %v336_v1 = vsel %vm79_vm0, %v335_v63, -inf  ;;  %v324_v2 = vsel %vm79_vm0, %v413_v0, 0.0 }
 0x875   :  { %337 = vmax.xlane.f32.xlu0 %v336_v1  ;;  %325 = vadd.xlane.f32.xlu1 %v324_v2  ;;  %v658_v29 = vpop.xlane.xlu1 %92 }
 0x876   :  { %v94_v31 = vmin.f32 %v658_v29, 15.0 }
 0x878   :  { %v99_v34 = vsub.f32 15.0, %v94_v31 }
 0x879   :  { %109 = vadd.xlane.f32.xlu0 %v108_v5  ;;  %v128_v38 = vpop.xlane.xlu1 %127 }
 0x87d   :  { %145 = vadd.xlane.f32.xlu0 %v144_v8 }
 0x881   :  { %163 = vadd.xlane.f32.xlu0 %v162_v11 }
 0x885   :  { %199 = vadd.xlane.f32.xlu0 %v198_v14 }
 0x889   :  { %235 = vadd.xlane.f32.xlu0 %v234_v17 }
 0x88d   :  { %271 = vadd.xlane.f32.xlu0 %v270_v20 }
 0x891   :  { %307 = vadd.xlane.f32.xlu0 %v306_v23 }
 0x902   :  { %v652_v25 = vpop.xlane.xlu0 %337 }
 0x903   :  { %vm339_vm15 = vcmp.eq.f32.partialorder %v504_v6, %v652_v25 }
 0x904   :  { %v414_v26 = vsel %vm339_vm15, 1.0, %v478_v48  ;;  %v671_v48 = vpop.xlane.xlu1 %81 }
 0x905   :  { %v342_v28 = vsel %vm79_vm0, %v414_v26, 0.0  ;;  %v684_v58 = vmax.f32 %v671_v48, %v510_v9  ;;  %vm363_vm0 = vcmp.eq.s32.totalorder %v498_v3, 0 }
 0x906   :  { %343 = vadd.xlane.f32.xlu0 %v342_v28  ;;  %v110_v32 = vpop.xlane.xlu0 %109 }
 0x907   :  { %v111_v35 = vmin.f32 %v110_v32, %v99_v34  ;;  %v95_v61 = vsub.f32 %v510_v9, %v684_v58  ;;  %v112_v0 = vsub.f32 %v516_v12, %v684_v58  ;;  %v130_v1 = vsub.f32 %v522_v15, %v684_v58 }
 0x908   :  { %v182_v50 = vpop.xlane.xlu1 %181  ;;  %v148_v7 = vsub.f32 %v528_v18, %v684_v58  ;;  %v166_v9 = vsub.f32 %v534_v21, %v684_v58  ;;  %v184_v15 = vsub.f32 %v540_v24, %v684_v58  ;;  %v202_v14 = vsub.f32 %v546_v27, %v684_v58 }
 0x909   :  { %v117_v37 = vsub.f32 %v99_v34, %v111_v35  ;;  %v96_v2 = vmul.f32 1.442695, %v95_v61  ;;  %v113_v5 = vmul.f32 1.442695, %v112_v0  ;;  %v131_v10 = vmul.f32 1.442695, %v130_v1 }
 0x90a   :  { %v146_v41 = vpop.xlane.xlu0 %145  ;;  %v149_v12 = vmul.f32 1.442695, %v148_v7  ;;  %v167_v13 = vmul.f32 1.442695, %v166_v9  ;;  %v185_v16 = vmul.f32 1.442695, %v184_v15  ;;  %v220_v21 = vsub.f32 %v552_v30, %v684_v58 }
 0x90b   :  { %v663_v40 = vmin.f32 %v128_v38, %v117_v37  ;;  %419 = vpow2.f32 %v96_v2  ;;  %v203_v17 = vmul.f32 1.442695, %v202_v14  ;;  %v238_v19 = vsub.f32 %v558_v33, %v684_v58 }
 0x90c   :  { %v218_v56 = vpop.xlane.xlu1 %217  ;;  %421 = vpow2.f32 %v113_v5  ;;  %v221_v24 = vmul.f32 1.442695, %v220_v21  ;;  %v256_v27 = vsub.f32 %v564_v36, %v684_v58  ;;  %v274_v30 = vsub.f32 %v570_v39, %v684_v58 }
 0x90d   :  { %v135_v6 = vsub.f32 %v117_v37, %v663_v40  ;;  %423 = vpow2.f32 %v131_v10  ;;  %v239_v28 = vmul.f32 1.442695, %v238_v19  ;;  %v292_v38 = vsub.f32 %v576_v42, %v684_v58 }
 0x90e   :  { %v164_v46 = vpop.xlane.xlu0 %163  ;;  %425 = vpow2.f32 %v149_v12  ;;  %v257_v33 = vmul.f32 1.442695, %v256_v27  ;;  %v310_v39 = vsub.f32 %v582_v45, %v684_v58  ;;  %v328_v42 = vsub.f32 %v614_v62, %v684_v58 }
 0x90f   :  { %v666_v43 = vmin.f32 %v146_v41, %v135_v6  ;;  %427 = vpow2.f32 %v167_v13 }
 0x910   :  { %v254_v8 = vpop.xlane.xlu1 %253  ;;  %429 = vpow2.f32 %v185_v16  ;;  %v329_v61 = vmul.f32 1.442695, %v328_v42 }
 0x911   :  { %v153_v44 = vsub.f32 %v135_v6, %v666_v43  ;;  %431 = vpow2.f32 %v203_v17 }
 0x912   :  { %v200_v53 = vpop.xlane.xlu0 %199  ;;  %433 = vpow2.f32 %v221_v24 }
 0x913   :  { %v669_v47 = vmin.f32 %v164_v46, %v153_v44  ;;  %435 = vpow2.f32 %v239_v28  ;;  %v275_v46 = vmul.f32 1.442695, %v274_v30 }
 0x914   :  { %437 = vpow2.f32 %v257_v33 }
 0x915   :  { %v171_v49 = vsub.f32 %v153_v44, %v669_v47  ;;  %v420_v23 = vpop.eup %419  ;;  %v290_v44 = vpop.xlane.xlu1 %289  ;;  %439 = vpow2.f32 %v275_v46 }
 0x916   :  { %v236_v60 = vpop.xlane.xlu0 %235  ;;  %v422_v26 = vpop.eup %421  ;;  %v98_v6 = vmul.f32 %v420_v23, %v94_v31 }
 0x917   :  { %v674_v51 = vmin.f32 %v182_v50, %v171_v49  ;;  %v115_v32 = vmul.f32 %v422_v26, %v111_v35  ;;  %v424_v37 = vpop.eup %423 }
 0x918   :  { %v133_v36 = vmul.f32 %v424_v37, %v663_v40  ;;  %v426_v41 = vpop.eup %425 }
 0x919   :  { %v189_v52 = vsub.f32 %v171_v49, %v674_v51  ;;  %v116_v35 = vadd.f32 %v115_v32, %v98_v6  ;;  %v151_v49 = vmul.f32 %v426_v41, %v666_v43  ;;  %v346_v43 = vsub.f32 %v652_v25, %v684_v58  ;;  %v326_v21 = vpop.xlane.xlu1 %325 }
 0x91a   :  { %v272_v20 = vpop.xlane.xlu0 %271 }
 0x91b   :  { %v677_v54 = vmin.f32 %v200_v53, %v189_v52  ;;  %v293_v53 = vmul.f32 1.442695, %v292_v38  ;;  %v134_v29 = vadd.f32 %v133_v36, %v116_v35 }
 0x91d   :  { %v207_v55 = vsub.f32 %v189_v52, %v677_v54  ;;  %v428_v52 = vpop.eup %427  ;;  %441 = vpow2.f32 %v293_v53 }
 0x91e   :  { %v169_v31 = vmul.f32 %v428_v52, %v669_v47  ;;  %v430_v40 = vpop.eup %429  ;;  %v308_v2 = vpop.xlane.xlu0 %307 }
 0x91f   :  { %v680_v57 = vmin.f32 %v218_v56, %v207_v55  ;;  %v152_v56 = vadd.f32 %v151_v49, %v134_v29 }
 0x921   :  { %v225_v59 = vsub.f32 %v207_v55, %v680_v57  ;;  %v311_v55 = vmul.f32 1.442695, %v310_v39  ;;  %v170_v0 = vadd.f32 %v169_v31, %v152_v56 }
 0x923   :  { %v689_v63 = vmin.f32 %v236_v60, %v225_v59  ;;  %v432_v60 = vpop.eup %431  ;;  %443 = vpow2.f32 %v311_v55 }
 0x924   :  { %v205_v1 = vmul.f32 %v432_v60, %v677_v54  ;;  %v434_v62 = vpop.eup %433  ;;  %445 = vpow2.f32 %v329_v61 }
 0x925   :  { %v243_v4 = vsub.f32 %v225_v59, %v689_v63  ;;  %v187_v59 = vmul.f32 %v430_v40, %v674_v51  ;;  %v436_v7 = vpop.eup %435  ;;  %v351_v51 = vsub.f32 %v671_v48, %v684_v58 }
 0x926   :  { %v241_v25 = vmul.f32 %v436_v7, %v689_v63  ;;  %v438_v9 = vpop.eup %437 }
 0x927   :  { %v700_v11 = vmin.f32 %v254_v8, %v243_v4  ;;  %v188_v47 = vadd.f32 %v187_v59, %v170_v0  ;;  %v347_v8 = vmul.f32 1.442695, %v346_v43  ;;  %v440_v13 = vpop.eup %439  ;;  %v352_v14 = vmul.f32 1.442695, %v351_v51 }
 0x928   :  { %v442_v16 = vpop.eup %441 }
 0x929   :  { %v261_v18 = vsub.f32 %v243_v4, %v700_v11  ;;  %v223_v4 = vmul.f32 %v434_v62, %v680_v57  ;;  %v206_v10 = vadd.f32 %v205_v1, %v188_v47  ;;  %v259_v54 = vmul.f32 %v438_v9, %v700_v11 }
 0x92a   :  { %447 = vpow2.f32 %v347_v8 }
 0x92b   :  { %v711_v22 = vmin.f32 %v272_v20, %v261_v18  ;;  %v224_v12 = vadd.f32 %v223_v4, %v206_v10  ;;  %449 = vpow2.f32 %v352_v14 }
 0x92d   :  { %v279_v34 = vsub.f32 %v261_v18, %v711_v22  ;;  %v242_v18 = vadd.f32 %v241_v25, %v224_v12  ;;  %v277_v57 = vmul.f32 %v440_v13, %v711_v22  ;;  %v444_v24 = vpop.eup %443 }
 0x92e   :  { %v446_v23 = vpop.eup %445 }
 0x92f   :  { %v291_v50 = vmin.f32 %v290_v44, %v279_v34  ;;  %v260_v17 = vadd.f32 %v259_v54, %v242_v18 }
 0x931   :  { %v297_v45 = vsub.f32 %v279_v34, %v291_v50  ;;  %v295_v19 = vmul.f32 %v442_v16, %v291_v50  ;;  %v278_v27 = vadd.f32 %v277_v57, %v260_v17 }
 0x933   :  { %v309_v5 = vmin.f32 %v308_v2, %v297_v45  ;;  %v296_v26 = vadd.f32 %v295_v19, %v278_v27 }
 0x934   :  { %v448_v37 = vpop.eup %447 }
 0x935   :  { %v315_v15 = vsub.f32 %v297_v45, %v309_v5  ;;  %v313_v63 = vmul.f32 %v444_v24, %v309_v5  ;;  %v450_v6 = vpop.eup %449 }
 0x937   :  { %v327_v20 = vmin.f32 %v326_v21, %v315_v15  ;;  %v314_v32 = vadd.f32 %v313_v63, %v296_v26 }
 0x939   :  { %v331_v28 = vmul.f32 %v446_v23, %v327_v20  ;;  %v333_v11 = vsub.f32 %v315_v15, %v327_v20 }
 0x93b   :  { %v332_v33 = vadd.f32 %v331_v28, %v314_v32 }
 0x993   :  { %v344_v30 = vpop.xlane.xlu0 %343 }
 0x994   :  { %v345_v34 = vmin.f32 %v344_v30, %v333_v11 }
 0x996   :  { %v349_v38 = vmul.f32 %v448_v37, %v345_v34 }
 0x998   :  { %v350_v22 = vadd.f32 %v349_v38, %v332_v33 }
 0x99a   :  { %v354_v36 = vadd.f32 %v450_v6, %v350_v22 }
 0x99c   :  { %451 = vlog2.f32 %v354_v36 }
 0x9a6   :  { %v452_v41 = vpop.eup %451 }
 0x9a7   :  { %v356_v44 = vmul.f32 0.6931472, %v452_v41 }
 0x9a9   :  { %v357_v46 = vadd.f32 %v356_v44, %v684_v58 }
 0x9ab   :  { %v358_v39 = vsub.f32 %v357_v46, %v671_v48 }
 0x9ad   :  { %v364_v35 = vsel %vm363_vm0, %v358_v39, 0.0 }
 0x9ae   :  { %373 = vst [vmem:[#allocation2] sm:$0xff] %v364_v35 }
 0x9af   :  { %464 = shalt.err (!%p461_p4)
}
 0x9b0   :  { %s465_s16 = scalar_lea.hbm %s756_s2, 128 }
 0x9b1   :  { %p466_p5 = scmp.ne.s32.totalorder %s756_s2, %s465_s16  ;;  %p469_p6 = scmp.lt.u32.totalorder %s465_s16, %s756_s2 }
 0x9b3   :  { %p471_p7 = pnand %p469_p6, %p466_p5 }
 0x9b5   :  { %474 = shalt.err (!%p471_p7)
}
 0x9b6   :  { %383 = dma.vmem_to_hbm [thread:$0]  %s381_s1, 128, %s756_s2, [#allocation3]  }
 0x9b7   :  { %475 = dma.done.wait [#allocation3], 128  }
 0x9b8   :  { %476 = vsyncadd [#allocation3], 4294967168 }
 0x9b9   :  { %387 = vsyncpa [#allocation3], 1 }

</bundles_post_ra>
